<compile_context>
chip_gen: v7x
topology: tpu7x:2x2x1
jax: 0.10.0
libtpu: 0.0.40
codegen_flags: <defaults>
</compile_context>

<pallas_src>
import functools

import jax
import jax.numpy as jnp
import numpy as np
from jax.experimental import pallas as pl
from jax.experimental.pallas import tpu as pltpu

EPS_LOG = 1e-7
EPS_DEN = 1e-5
_LANES = 128
_SUBLANES = 8


def _round_up(x, m):
    return ((x + m - 1) // m) * m


def _default_vmem_budget_bytes():
    # Generation-aware input-block budget. v5e/v6e report 128 MiB physical
    # VMEM, v7x 64 MiB/TC -> (3/8)*cap capped at 24 MiB gives 24 MiB on all,
    # with the explicit vmem_limit_bytes below providing headroom over v5e's
    # 16 MiB scoped default while staying far below v7x's 64 MiB physical.
    cap = 64 << 20
    try:
        info = pltpu.get_tpu_info()
        cap = int(getattr(info, "vmem_capacity_bytes", cap))
    except Exception:
        pass
    return max(8 << 20, min(24 << 20, (3 * cap) // 8))


def _pick_tile_rows(R, N2, out_itemsize, lab_itemsize, mask_itemsize,
                    max_tile_rows=4096, vmem_budget_bytes=None):
    if vmem_budget_bytes is None:
        vmem_budget_bytes = _default_vmem_budget_bytes()
    # Per-row VMEM bytes for ONE pipeline buffer:
    #   output block (tr, N2), label block (tr, N2), and the (tr, 1) mask
    #   block -- which pads to (tr, 128) lanes in VMEM (hidden 128x blow-up).
    per_row = N2 * (out_itemsize + lab_itemsize) + _LANES * mask_itemsize
    per_row *= 2                                     # double-buffered inputs
    fixed = 2 * (_SUBLANES * _LANES * 4)             # (1,8,128) f32 out, 2 bufs
    tr = int((vmem_budget_bytes - fixed) // max(per_row, 1))
    tr = min(int(max_tile_rows), tr)
    # bf16's native sublane tile is (16,128): keep tr a multiple of 16 so the
    # label block never needs a sublane relayout (and small-R lowering works).
    tr = max(16, (tr // 16) * 16)
    # Keep at least 2 chunks when there is enough work so the "parallel" grid
    # axis actually feeds both TensorCores on v7x.
    if R >= 32:
        tr = min(tr, _round_up(pl.cdiv(R, 2), 16))
    tr = min(tr, _round_up(R, 16))
    return max(16, (tr // 16) * 16)


def _lognll_mask_kernel(R, tr, out_ref, lab_ref, mask_ref, part_ref):
    """One row-chunk -> partial sums of (masked per-row loss) and (mask)."""
    i = pl.program_id(0)
    # Ragged last chunk handled in-kernel (no jnp.pad in the wrapper). Rows
    # >= R read stale VMEM, so neutralize them before any math can NaN.
    rows = i * tr + jax.lax.broadcasted_iota(jnp.int32, (tr, 1), 0)
    valid = rows < R                                          # (tr, 1)

    # Cast to f32 in-register right after load (narrow HBM traffic; f32 math
    # keeps v5e -- no bf16 VPU/EUP -- happy; bf16 `output` is also fine).
    o = out_ref[...].astype(jnp.float32)                      # (tr, N2)
    l = lab_ref[...].astype(jnp.float32)                      # (tr, N2)
    m = mask_ref[...].astype(jnp.float32)                     # (tr, 1)

    o = jnp.where(valid, o, 1.0)      # log(1+eps) finite on invalid rows
    l = jnp.where(valid, l, 0.0)
    m = jnp.where(valid, m, 0.0)

    num = jnp.sum(jnp.log(o + EPS_LOG) * l, axis=-1, keepdims=True)   # (tr,1)
    den = jnp.sum(l, axis=-1, keepdims=True)                          # (tr,1)
    # Guard ONLY invalid rows: real rows with label.sum()==0 still produce
    # NaN, exactly like the PyTorch reference.
    den = jnp.where(valid, den, 1.0)
    rowloss = (num / den) * m                                         # (tr,1)

    num_p = jnp.sum(rowloss)
    den_p = jnp.sum(m)

    # Single lane-dense (1, 8, 128) block per chunk (one unmasked store, one
    # output DMA descriptor): numerator at [0,0,0], mask-sum at [0,1,0],
    # zeros elsewhere so the host-side dense jnp.sum stays exact.
    sub = jax.lax.broadcasted_iota(jnp.int32, (_SUBLANES, _LANES), 0)
    lane = jax.lax.broadcasted_iota(jnp.int32, (_SUBLANES, _LANES), 1)
    blk = jnp.where((sub == 0) & (lane == 0), num_p,
                    jnp.where((sub == 1) & (lane == 0), den_p, 0.0))
    part_ref[...] = blk[None].astype(jnp.float32)


def log_nll_mask_neighbour_loss(output, label, mask, *,
                                max_tile_rows=4096, vmem_budget_bytes=None):
    """output: (B, N1, N2); label: (B, N1, N2) binary; mask: (B, N1). Scalar."""
    B, N1, N2 = output.shape
    R = B * N1

    # No wrapper-side dtype changes, no padding: reshapes only.
    out2d = output.reshape(R, N2)
    lab2d = label.reshape(R, N2)
    mask2d = mask.reshape(R, 1)

    vmem_budget = (vmem_budget_bytes if vmem_budget_bytes is not None
                   else _default_vmem_budget_bytes())
    tr = _pick_tile_rows(R, N2, out2d.dtype.itemsize, lab2d.dtype.itemsize,
                         mask2d.dtype.itemsize, max_tile_rows=max_tile_rows,
                         vmem_budget_bytes=vmem_budget)
    num_chunks = pl.cdiv(R, tr)

    # TODO(synk): for very large N2 (a single (16, N2) block >> VMEM budget)
    # add N2 as a trailing "arbitrary" grid axis instead of loading full rows.
    bytes_accessed = (R * N2 * (out2d.dtype.itemsize + lab2d.dtype.itemsize)
                      + R * mask2d.dtype.itemsize
                      + num_chunks * _SUBLANES * _LANES * 4)

    part = pl.pallas_call(
        functools.partial(_lognll_mask_kernel, R, tr),
        out_shape=jax.ShapeDtypeStruct((num_chunks, _SUBLANES, _LANES),
                                       jnp.float32),
        grid_spec=pltpu.PrefetchScalarGridSpec(
            num_scalar_prefetch=0,
            grid=(num_chunks,),
            in_specs=[
                pl.BlockSpec((tr, N2), lambda i: (i, 0)),
                pl.BlockSpec((tr, N2), lambda i: (i, 0)),
                # NOTE: this (tr, 1) block pads to (tr, 128) lanes in VMEM and
                # its HBM->VMEM DMA is sublane-strided. The VMEM cost is
                # accounted in _pick_tile_rows; the traffic (4 B/row) is tiny
                # next to the (tr, N2) blocks.
                pl.BlockSpec((tr, 1), lambda i: (i, 0)),
            ],
            out_specs=pl.BlockSpec((1, _SUBLANES, _LANES),
                                   lambda i: (i, 0, 0)),
        ),
        compiler_params=pltpu.CompilerParams(
            # Independent chunks -> both TensorCores on v7x.
            dimension_semantics=("parallel",),
            # Raise v5e's 16 MiB scoped default; stays well under v7x's
            # 64 MiB physical VMEM/TC, leaving headroom for Mosaic scratch.
            vmem_limit_bytes=int(min(vmem_budget + (8 << 20), 48 << 20)),
        ),
        cost_estimate=pl.CostEstimate(
            flops=int(3 * R * N2),
            transcendentals=int(R * N2),
            bytes_accessed=int(bytes_accessed),
        ),
    )(out2d, lab2d, mask2d)

    # Only [chunk, 0, 0] / [chunk, 1, 0] are non-zero -> dense sums are exact.
    num_total = jnp.sum(part[:, 0, :])
    den_total = jnp.sum(part[:, 1, :])
    return -num_total / (den_total + EPS_DEN)


def _reference(output, label, mask):
    label = label.astype(jnp.float32)
    mask = mask.astype(jnp.float32)
    output = output.astype(jnp.float32)
    loss = jnp.sum(jnp.log(output + EPS_LOG) * label, axis=-1)
    loss = loss / jnp.sum(label, axis=-1)
    loss = loss * mask
    return -jnp.sum(loss) / (jnp.sum(mask) + EPS_DEN)


def _make_inputs(key, B, N1, N2):
    k1, k2, k3 = jax.random.split(key, 3)
    output = jax.random.uniform(k1, (B, N1, N2), dtype=jnp.float32,
                                minval=0.01, maxval=1.0)
    # binary label shipped as bf16 (0/1 exact) to cut HBM traffic
    label = (jax.random.uniform(k2, (B, N1, N2)) > 0.5).astype(jnp.bfloat16)
    # guarantee at least one positive per row so label.sum(-1) > 0
    label = label.at[..., 0].set(1.0)
    mask = (jax.random.uniform(k3, (B, N1)) > 0.3).astype(jnp.float32)
    return output, label, mask


if __name__ == "__main__":
    # TODO(synk): aggregation='sum' and autofill padding branches are not
    # exercised (module defaults are aggregation=None, autofill=None), nor is
    # the mask=None per-row-loss return path.
    key = jax.random.PRNGKey(0)
    ka, kb = jax.random.split(key)

    # Case 1: small aligned shapes (single chunk).
    output, label, mask = _make_inputs(ka, 2, 8, 128)
    loss = jax.block_until_ready(log_nll_mask_neighbour_loss(output, label, mask))
    ref = _reference(output, label, mask)
    np.testing.assert_allclose(np.asarray(loss), np.asarray(ref),
                               rtol=1e-5, atol=1e-6)

    # Case 2: ragged row count (R=21, forced tr=16 -> 2 chunks, in-kernel
    # tail masking path exercised; no wrapper padding anywhere).
    output2, label2, mask2 = _make_inputs(kb, 3, 7, 128)
    loss2 = jax.block_until_ready(
        log_nll_mask_neighbour_loss(output2, label2, mask2, max_tile_rows=16))
    ref2 = _reference(output2, label2, mask2)
    np.testing.assert_allclose(np.asarray(loss2), np.asarray(ref2),
                               rtol=1e-5, atol=1e-6)

    print("KERNEL_OK")
</pallas_src>

<mosaic_0001>
module attributes {stable_mosaic.version = 11 : i64} {
  func.func @_lognll_mask_kernel(%arg0: i32, %arg1: memref<16x128xf32, #tpu.memory_space<vmem>>, %arg2: memref<16x128xbf16, #tpu.memory_space<vmem>>, %arg3: memref<16x1xf32, #tpu.memory_space<vmem>>, %arg4: memref<1x8x128xf32, #tpu.memory_space<vmem>>) attributes {dimension_semantics = [#tpu.dimension_semantics<parallel>], iteration_bounds = array<i64: 1>, scalar_prefetch = 0 : i64, scratch_operands = 0 : i64, tpu.core_type = #tpu.core_type<tc>, window_params = [{transform_indices = @transform_0, window_bounds = array<i64: 16, 128>}, {transform_indices = @transform_1, window_bounds = array<i64: 16, 128>}, {transform_indices = @transform_2, window_bounds = array<i64: 16, 1>}, {transform_indices = @transform_3, window_bounds = array<i64: 1, 8, 128>}]} {
    %c16_i32 = arith.constant 16 : i32
    %0 = arith.muli %arg0, %c16_i32 : i32
    %1 = tpu.iota {dimensions = array<i32: 0>} : vector<16x1xi32>
    %2 = vector.broadcast %0 : i32 to vector<16x1xi32>
    %3 = arith.addi %2, %1 : vector<16x1xi32>
    %c16_i32_0 = arith.constant 16 : i32
    %4 = vector.broadcast %c16_i32_0 : i32 to vector<16x1xi32>
    %5 = arith.cmpi slt, %3, %4 : vector<16x1xi32>
    %c0 = arith.constant 0 : index
    %c0_1 = arith.constant 0 : index
    %6 = vector.load %arg1[%c0, %c0_1] : memref<16x128xf32, #tpu.memory_space<vmem>>, vector<16x128xf32>
    %c0_2 = arith.constant 0 : index
    %c0_3 = arith.constant 0 : index
    %7 = vector.load %arg2[%c0_2, %c0_3] : memref<16x128xbf16, #tpu.memory_space<vmem>>, vector<16x128xbf16>
    %8 = arith.extf %7 : vector<16x128xbf16> to vector<16x128xf32>
    %c0_4 = arith.constant 0 : index
    %c0_5 = arith.constant 0 : index
    %9 = vector.load %arg3[%c0_4, %c0_5] : memref<16x1xf32, #tpu.memory_space<vmem>>, vector<16x1xf32>
    %cst = arith.constant 1.000000e+00 : f32
    %10 = vector.shape_cast %5 : vector<16x1xi1> to vector<16x1xi1>
    %11 = vector.broadcast %10 : vector<16x1xi1> to vector<16x128xi1>
    %12 = vector.broadcast %cst : f32 to vector<16x128xf32>
    %13 = arith.select %11, %6, %12 : vector<16x128xi1>, vector<16x128xf32>
    %cst_6 = arith.constant 0.000000e+00 : f32
    %14 = vector.shape_cast %5 : vector<16x1xi1> to vector<16x1xi1>
    %15 = vector.broadcast %14 : vector<16x1xi1> to vector<16x128xi1>
    %16 = vector.broadcast %cst_6 : f32 to vector<16x128xf32>
    %17 = arith.select %15, %8, %16 : vector<16x128xi1>, vector<16x128xf32>
    %cst_7 = arith.constant 0.000000e+00 : f32
    %18 = vector.broadcast %cst_7 : f32 to vector<16x1xf32>
    %19 = arith.select %5, %9, %18 : vector<16x1xi1>, vector<16x1xf32>
    %cst_8 = arith.constant 1.000000e-07 : f32
    %20 = vector.broadcast %cst_8 : f32 to vector<16x128xf32>
    %21 = arith.addf %13, %20 : vector<16x128xf32>
    %22 = math.log %21 : vector<16x128xf32>
    %23 = arith.mulf %22, %17 : vector<16x128xf32>
    %cst_9 = arith.constant dense<0.000000e+00> : vector<16xf32>
    %24 = vector.multi_reduction <add>, %23, %cst_9 [1] : vector<16x128xf32> to vector<16xf32>
    %25 = vector.shape_cast %24 : vector<16xf32> to vector<16x1xf32>
    %cst_10 = arith.constant dense<0.000000e+00> : vector<16xf32>
    %26 = vector.multi_reduction <add>, %17, %cst_10 [1] : vector<16x128xf32> to vector<16xf32>
    %27 = vector.shape_cast %26 : vector<16xf32> to vector<16x1xf32>
    %cst_11 = arith.constant 1.000000e+00 : f32
    %28 = vector.broadcast %cst_11 : f32 to vector<16x1xf32>
    %29 = arith.select %5, %27, %28 : vector<16x1xi1>, vector<16x1xf32>
    %30 = arith.divf %25, %29 : vector<16x1xf32>
    %31 = arith.mulf %30, %19 : vector<16x1xf32>
    %32 = vector.shape_cast %31 : vector<16x1xf32> to vector<1x16x1xf32>
    %cst_12 = arith.constant dense<0.000000e+00> : vector<1xf32>
    %33 = vector.multi_reduction <add>, %32, %cst_12 [1, 2] : vector<1x16x1xf32> to vector<1xf32>
    %34 = vector.shape_cast %33 : vector<1xf32> to vector<1x1x1xf32>
    %35 = vector.extract %34[0, 0, 0] : f32 from vector<1x1x1xf32>
    %36 = vector.shape_cast %19 : vector<16x1xf32> to vector<1x16x1xf32>
    %cst_13 = arith.constant dense<0.000000e+00> : vector<1xf32>
    %37 = vector.multi_reduction <add>, %36, %cst_13 [1, 2] : vector<1x16x1xf32> to vector<1xf32>
    %38 = vector.shape_cast %37 : vector<1xf32> to vector<1x1x1xf32>
    %39 = vector.extract %38[0, 0, 0] : f32 from vector<1x1x1xf32>
    %40 = tpu.iota {dimensions = array<i32: 0>} : vector<8x128xi32>
    %41 = tpu.iota {dimensions = array<i32: 1>} : vector<8x128xi32>
    %c0_i32 = arith.constant 0 : i32
    %42 = vector.broadcast %c0_i32 : i32 to vector<8x128xi32>
    %43 = arith.cmpi eq, %40, %42 : vector<8x128xi32>
    %c0_i32_14 = arith.constant 0 : i32
    %44 = vector.broadcast %c0_i32_14 : i32 to vector<8x128xi32>
    %45 = arith.cmpi eq, %41, %44 : vector<8x128xi32>
    %46 = arith.andi %43, %45 : vector<8x128xi1>
    %c1_i32 = arith.constant 1 : i32
    %47 = vector.broadcast %c1_i32 : i32 to vector<8x128xi32>
    %48 = arith.cmpi eq, %40, %47 : vector<8x128xi32>
    %c0_i32_15 = arith.constant 0 : i32
    %49 = vector.broadcast %c0_i32_15 : i32 to vector<8x128xi32>
    %50 = arith.cmpi eq, %41, %49 : vector<8x128xi32>
    %51 = arith.andi %48, %50 : vector<8x128xi1>
    %cst_16 = arith.constant 0.000000e+00 : f32
    %52 = vector.broadcast %39 : f32 to vector<8x128xf32>
    %53 = vector.broadcast %cst_16 : f32 to vector<8x128xf32>
    %54 = arith.select %51, %52, %53 : vector<8x128xi1>, vector<8x128xf32>
    %55 = vector.broadcast %35 : f32 to vector<8x128xf32>
    %56 = arith.select %46, %55, %54 : vector<8x128xi1>, vector<8x128xf32>
    %57 = vector.shape_cast %56 : vector<8x128xf32> to vector<1x8x128xf32>
    %c0_17 = arith.constant 0 : index
    %c0_18 = arith.constant 0 : index
    %c0_19 = arith.constant 0 : index
    %58 = vector.load %arg4[%c0_17, %c0_18, %c0_19] : memref<1x8x128xf32, #tpu.memory_space<vmem>>, vector<1x8x128xf32>
    tpu.vector_store %arg4[%c0_17, %c0_18, %c0_19], %57 {strides = array<i32>} : memref<1x8x128xf32, #tpu.memory_space<vmem>>, vector<1x8x128xf32>,
    return
  }
  func.func @transform_0(%arg0: i32) -> (i32, i32) {
    %c0_i32 = arith.constant 0 : i32
    %c0_i32_0 = arith.constant 0 : i32
    return %arg0, %c0_i32 : i32, i32
  }
  func.func @transform_1(%arg0: i32) -> (i32, i32) {
    %c0_i32 = arith.constant 0 : i32
    %c0_i32_0 = arith.constant 0 : i32
    return %arg0, %c0_i32 : i32, i32
  }
  func.func @transform_2(%arg0: i32) -> (i32, i32) {
    %c0_i32 = arith.constant 0 : i32
    %c0_i32_0 = arith.constant 0 : i32
    return %arg0, %c0_i32 : i32, i32
  }
  func.func @transform_3(%arg0: i32) -> (i32, i32, i32) {
    %c0_i32 = arith.constant 0 : i32
    %c0_i32_0 = arith.constant 0 : i32
    %c0_i32_1 = arith.constant 0 : i32
    return %arg0, %c0_i32, %c0_i32_0 : i32, i32, i32
  }
}

</mosaic_0001>

<bundles_post_ra>
// kernel: tpu_custom_call.1
= control target key start
LH: loop header
LB: loop body
LE: loop exit
PB: predicated region body
PF: predicated region fallthrough
CT: control target
= control target key end

     0   :  { %8 = vsyncpa [#allocation3], 0  ;;  %s264_s0 = inlined_call_operand.vmem [shape: f32[16,128], index: 0, kind: input, shape index: {}]   ;;  %s265_s1 = inlined_call_operand.hbm [shape: bf16[16,128], index: 1, kind: input, shape index: {}]   ;;  %s266_s2 = inlined_call_operand.vmem [shape: f32[16,1], index: 2, kind: input, shape index: {}]   ;;  %s267_s3 = inlined_call_operand.hbm [shape: f32[1,8,128], index: 3, kind: output, shape index: {}]  }
   0x1   :  { %9 = vsyncpa [#allocation4], 0  ;;  %s200_s12 = smov [#allocation2]   ;;  %s152_s16 = scalar_lea.hbm %s265_s1, 128 }
   0x2   :  { %s17_s13 = sshll.u32 %s200_s12, 4  ;;  %p153_p0 = scmp.ne.s32.totalorder %s265_s1, %s152_s16  ;;  %s18_s13 = int_to_ptr.vmem [resolvable:$true] %s17_s13 }
   0x3   :  { %p156_p1 = scmp.lt.u32.totalorder %s152_s16, %s265_s1 }
   0x5   :  { %p158_p2 = pnand %p156_p1, %p153_p0 }
   0x7   :  { %161 = shalt.err (!%p158_p2)
}
   0x8   :  { %s162_s21 = scalar_lea.vmem %s18_s13, 128  ;;  %p167_p4 = scmp.lt.s32.totalorder %s18_s13, %s18_s13 }
   0x9   :  { %p163_p3 = scmp.ne.s32.totalorder %s18_s13, %s162_s21  ;;  %p168_p5 = scmp.lt.s32.totalorder %s162_s21, %s162_s21 }
   0xb   :  { %p169_p6 = por %p168_p5, %p167_p4 }
   0xd   :  { %p170_p7 = pnand %p169_p6, %p163_p3 }
   0xf   :  { %173 = shalt.err (!%p170_p7)
}
  0x10   :  { %s201_s22 = smov 64   ;;  %s202_s23 = smov 4  }
  0x11   :  { %23 = dma.hbm_to_vmem [thread:$0]  %s265_s1, 128, %s18_s13, [#allocation3], %s201_s22, %s201_s22, %s202_s23  }
  0x12   :  { %196 = dma.done.wait [#allocation3], 128  }
  0x13   :  { %197 = vsyncadd [#allocation3], 4294967168  ;;  %v133_v0 = vld [vmem:[#allocation2] sm:$0xff]   ;;  %v39_v2 = vld [vmem:[%s264_s0 + $0x8] sm:$0xff]  ;;  %vm80_vm0 = vcmask 7168   ;;  %v30_v45 = vlaneseq  ;;  %s203_s5 = smov [#allocation5]  }
  0x14   :  { %v38_v1 = vld [vmem:[%s264_s0] sm:$0xff]  ;;  %v134_v3 = vunpack.c.l.bf16 %v133_v0  ;;  %v57_v5 = vadd.f32 1e-07, %v39_v2  ;;  %v135_v6 = vunpack.c.h.bf16 %v133_v0  ;;  %v45_v14 = vld [vmem:[%s266_s2 + $0x8] sm:$0xff]  ;;  %s123_s6 = sshll.u32 %s203_s5, 4  ;;  %s124_s6 = int_to_ptr.vmem [resolvable:$true] %s123_s6 }
  0x15   :  { %v56_v4 = vadd.f32 1e-07, %v38_v1  ;;  %v44_v13 = vld [vmem:[%s266_s2] sm:$0xff]  ;;  %v94_v16 = vsel %vm80_vm0, %v45_v14, 0.0  ;;  %v31_v46 = vshrl.u32 %v30_v45, 7  ;;  %v106_v47 = vand.u32 127, %v30_v45  ;;  %p179_p9 = scmp.lt.s32.totalorder %s124_s6, %s124_s6 }
  0x16   :  { %68 = vadd.xlane.f32.xlu0 %v134_v3  ;;  %v93_v15 = vsel %vm80_vm0, %v44_v13, 0.0  ;;  %s174_s8 = scalar_lea.vmem %s124_s6, 128 }
  0x17   :  { %144 = vlog2.f32 %v56_v4  ;;  %v95_v17 = vadd.f32 %v94_v16, %v93_v15  ;;  %vm108_vm1 = vcmp.eq.s32.totalorder %v106_v47, 0  ;;  %vm110_vm2 = vcmp.eq.s32.totalorder %v31_v46, 1  ;;  %p175_p8 = scmp.ne.s32.totalorder %s124_s6, %s174_s8  ;;  %p180_p10 = scmp.lt.s32.totalorder %s174_s8, %s174_s8 }
  0x18   :  { %146 = vlog2.f32 %v57_v5  ;;  %vm107_vm3 = vcmp.eq.s32.totalorder %v31_v46, 0  ;;  %vm111_vm4 = vmand %vm110_vm2, %vm108_vm1 }
  0x19   :  { %vm109_vm5 = vmand %vm107_vm3, %vm108_vm1  ;;  %p181_p11 = por %p180_p10, %p179_p9 }
  0x1a   :  { %70 = vadd.xlane.f32.xlu0 %v135_v6 }
  0x1b   :  { %p182_p12 = pnand %p181_p11, %p175_p8 }
  0x21   :  { %v145_v7 = vpop.eup %144 }
  0x22   :  { %v147_v8 = vpop.eup %146  ;;  %v59_v9 = vmul.f32 0.6931472, %v145_v7 }
  0x23   :  { %v61_v10 = vmul.f32 0.6931472, %v147_v8 }
  0x24   :  { %v62_v11 = vmul.f32 %v134_v3, %v59_v9 }
  0x25   :  { %v63_v12 = vmul.f32 %v135_v6, %v61_v10 }
  0x26   :  { %64 = vadd.xlane.f32.xlu1 %v62_v11 }
  0x2a   :  { %66 = vadd.xlane.f32.xlu1 %v63_v12 }
  0x2e   :  { %96 = vadd.xlane.f32.xlu1 %v95_v17 }
  0xa3   :  { %v69_v18 = vpop.xlane.xlu0 %68 }
  0xa4   :  { %148 = vrcp.f32 %v69_v18 }
  0xa7   :  { %v71_v19 = vpop.xlane.xlu0 %70 }
  0xa8   :  { %150 = vrcp.f32 %v71_v19 }
  0xae   :  { %v149_v20 = vpop.eup %148 }
  0xb2   :  { %v151_v23 = vpop.eup %150 }
  0xb3   :  { %v65_v21 = vpop.xlane.xlu1 %64 }
  0xb4   :  { %v75_v22 = vmul.f32 %v149_v20, %v65_v21 }
  0xb6   :  { %v78_v25 = vmul.f32 %v75_v22, %v44_v13 }
  0xb7   :  { %v67_v24 = vpop.xlane.xlu1 %66 }
  0xb8   :  { %v77_v26 = vmul.f32 %v151_v23, %v67_v24  ;;  %v81_v28 = vsel %vm80_vm0, %v78_v25, 0.0 }
  0xba   :  { %v79_v27 = vmul.f32 %v77_v26, %v45_v14 }
  0xbb   :  { %v97_v31 = vpop.xlane.xlu1 %96 }
  0xbc   :  { %v82_v29 = vsel %vm80_vm0, %v79_v27, 0.0  ;;  %v98_v32 = vrot.slane %v97_v31, 4 }
  0xbd   :  { %v83_v30 = vadd.f32 %v82_v29, %v81_v28 }
  0xbe   :  { %v99_v33 = vadd.f32 %v98_v32, %v97_v31 }
  0xbf   :  { %84 = vadd.xlane.f32.xlu0 %v83_v30 }
  0xc0   :  { %v100_v34 = vrot.slane %v99_v33, 2 }
  0xc2   :  { %v101_v38 = vadd.f32 %v100_v34, %v99_v33 }
  0xc4   :  { %v102_v41 = vrot.slane %v101_v38, 1 }
  0xc6   :  { %v103_v44 = vadd.f32 %v102_v41, %v101_v38 }
 0x14c   :  { %v85_v35 = vpop.xlane.xlu0 %84 }
 0x14d   :  { %v86_v36 = vrot.slane %v85_v35, 4 }
 0x14f   :  { %v87_v37 = vadd.f32 %v86_v36, %v85_v35 }
 0x151   :  { %v88_v39 = vrot.slane %v87_v37, 2 }
 0x153   :  { %v89_v40 = vadd.f32 %v88_v39, %v87_v37 }
 0x155   :  { %v90_v42 = vrot.slane %v89_v40, 1 }
 0x157   :  { %v91_v43 = vadd.f32 %v90_v42, %v89_v40 }
 0x159   :  { %136 = vpush %v91_v43 }
 0x15a   :  { %138 = vpush %v103_v44 }
 0x18a   :  { %s137_s2 = spop %136 }
 0x18b   :  { %v114_v48 = vstv %s137_s2  ;;  %s139_s7 = spop %138 }
 0x18c   :  { %v112_v49 = vstv %s139_s7 }
 0x18d   :  { %v113_v50 = vsel %vm111_vm4, %v112_v49, 0.0 }
 0x18e   :  { %v115_v51 = vsel %vm109_vm5, %v114_v48, %v113_v50 }
 0x18f   :  { %116 = vst [vmem:[#allocation5] sm:$0xff] %v115_v51 }
 0x190   :  { %185 = shalt.err (!%p182_p12)
}
 0x191   :  { %s186_s11 = scalar_lea.hbm %s267_s3, 128 }
 0x192   :  { %p187_p13 = scmp.ne.s32.totalorder %s267_s3, %s186_s11  ;;  %p190_p0 = scmp.lt.u32.totalorder %s186_s11, %s267_s3 }
 0x194   :  { %p192_p1 = pnand %p190_p0, %p187_p13 }
 0x196   :  { %195 = shalt.err (!%p192_p1)
}
 0x197   :  { %126 = dma.vmem_to_hbm [thread:$0]  %s124_s6, 128, %s267_s3, [#allocation4]  }
 0x198   :  { %198 = dma.done.wait [#allocation4], 128  }
 0x199   :  { %199 = vsyncadd [#allocation4], 4294967168 }
 0x19a   :  { %130 = vsyncpa [#allocation3], 1 }
 0x19b   :  { %131 = vsyncpa [#allocation4], 1 }

</bundles_post_ra>
